<compile_context>
chip_gen: v7x
topology: tpu7x:2x2x1
jax: 0.10.0
libtpu: 0.0.40
codegen_flags: <defaults>
</compile_context>

<pallas_src>
import functools

import jax
import jax.numpy as jnp
from jax.experimental import pallas as pl
from jax.experimental.pallas import tpu as pltpu


def _round_up(n, m):
    return ((n + m - 1) // m) * m


# --------------------------------------------------------------------------- #
# Kernel: one batch tile per grid step, all four layers fused in VMEM.
# --------------------------------------------------------------------------- #
def _mlp_kernel(x_ref,
                w1_ref, b1_ref,
                w2_ref, b2_ref,
                w3_ref, b3_ref,
                w4_ref, b4_ref,
                o_ref):
    cdt = x_ref.dtype  # compute dtype for MXU inputs (f32 or bf16)

    h = jnp.dot(x_ref[...], w1_ref[...],
                preferred_element_type=jnp.float32) + b1_ref[...]
    h = jnp.maximum(h, 0.0).astype(cdt)

    h = jnp.dot(h, w2_ref[...],
                preferred_element_type=jnp.float32) + b2_ref[...]
    h = jnp.maximum(h, 0.0).astype(cdt)

    h = jnp.dot(h, w3_ref[...],
                preferred_element_type=jnp.float32) + b3_ref[...]
    h = jnp.maximum(h, 0.0).astype(cdt)

    o_ref[...] = (jnp.dot(h, w4_ref[...],
                          preferred_element_type=jnp.float32)
                  + b4_ref[...]).astype(o_ref.dtype)


# --------------------------------------------------------------------------- #
# One-time parameter preparation (outside the per-call jit path).
#   * weights stored as (in, out)  == torch nn.Linear weight transposed
#   * biases reshaped to (1, out), kept f32 (added after f32 accumulation)
#   * weights cast once to the compute dtype (f32 or bf16)
# --------------------------------------------------------------------------- #
def prepare_params(params, compute_dtype=jnp.float32):
    prepped = []
    for i in range(0, len(params), 2):
        w, b = params[i], params[i + 1]
        prepped.append(jnp.asarray(w, compute_dtype))
        prepped.append(jnp.asarray(b, jnp.float32).reshape(1, -1))
    return tuple(prepped)


def _choose_tiling(batch, block_batch, row_align):
    """Pick (tile_rows, grid_steps): big tiles, even step count, minimal padding."""
    batch_a = _round_up(batch, row_align)
    if batch_a <= block_batch:
        return batch_a, 1
    steps = pl.cdiv(batch_a, block_batch)
    if steps % 2:          # balance across v7x's 2 TensorCores; harmless elsewhere
        steps += 1
    tb = _round_up(pl.cdiv(batch_a, steps), row_align)
    return tb, steps


# --------------------------------------------------------------------------- #
# Forward wrapper.
# --------------------------------------------------------------------------- #
@functools.partial(jax.jit, static_argnames=("block_batch",))
def mlp_forward(x, params, *, block_batch=1024):
    """params = prepare_params(...) output: (w1, b1, ..., w4, b4)."""
    batch, in_dim = x.shape
    w1, b1, w2, b2, w3, b3, w4, b4 = params
    out_dim = w4.shape[-1]
    compute_dtype = w1.dtype
    itemsize = jnp.dtype(compute_dtype).itemsize

    x = x.astype(compute_dtype)

    # Sub-32-bit dtypes pack 2 rows / sublane -> align row tiles to 16 for bf16.
    row_align = 16 if itemsize < 4 else 8
    tb, steps = _choose_tiling(batch, block_batch, row_align)
    batch_p = tb * steps
    if batch_p != batch:
        x = jnp.pad(x, ((0, batch_p - batch), (0, 0)))

    # x / out tiles stream over the batch grid (double-buffered by Pallas);
    # weights & biases use a constant index_map -> fetched once, VMEM-resident.
    x_spec = pl.BlockSpec((tb, in_dim), lambda i: (i, 0))
    o_spec = pl.BlockSpec((tb, out_dim), lambda i: (i, 0))
    param_specs = [pl.BlockSpec(p.shape, lambda i: (0, 0)) for p in params]

    # Advisory cost hint (real, unpadded math / bytes).
    layer_dims = [w1.shape, w2.shape, w3.shape, w4.shape]
    flops = 2 * batch_p * sum(fi * fo for fi, fo in layer_dims)
    param_bytes = sum(p.size * p.dtype.itemsize for p in params)
    bytes_accessed = (x.size * itemsize + param_bytes + batch_p * out_dim * 4)
    cost = pl.CostEstimate(flops=int(flops), transcendentals=0,
                           bytes_accessed=int(bytes_accessed))

    # Explicit VMEM budget: double-buffered x/out tiles + resident params +
    # live f32 activations, with 2x margin.  Tiny (<4 MiB at tb=2048), so this
    # is well inside v5e's 16 MiB scoped default and v7x's 64 MiB physical VMEM.
    h_max = max(w1.shape[1], w2.shape[1], w3.shape[1])
    vmem_est = (2 * tb * in_dim * itemsize
                + 2 * tb * out_dim * 4
                + 2 * param_bytes
                + 3 * tb * h_max * 4)
    vmem_limit = int(min(max(2 * vmem_est, 16 << 20), 64 << 20))

    out = pl.pallas_call(
        _mlp_kernel,
        out_shape=jax.ShapeDtypeStruct((batch_p, out_dim), jnp.float32),
        grid=(steps,),
        in_specs=[x_spec] + param_specs,
        out_specs=o_spec,
        compiler_params=pltpu.CompilerParams(
            dimension_semantics=("parallel",),
            vmem_limit_bytes=vmem_limit),
        cost_estimate=cost,
    )(x, *params)

    return out[:batch] if batch_p != batch else out


# --------------------------------------------------------------------------- #
# Init / reference (pure JAX) for verification.
# --------------------------------------------------------------------------- #
def init_params(key, in_dim, h1, h2, h3, out_dim):
    """nn.Linear-style init; weights stored as (in, out) = torch W.T, bias (out,)."""
    dims = [(in_dim, h1), (h1, h2), (h2, h3), (h3, out_dim)]
    params = []
    for fan_in, fan_out in dims:
        kw, kb, key = jax.random.split(key, 3)
        bound = 1.0 / jnp.sqrt(jnp.float32(fan_in))
        w = jax.random.uniform(kw, (fan_in, fan_out), jnp.float32, -bound, bound)
        b = jax.random.uniform(kb, (fan_out,), jnp.float32, -bound, bound)
        params += [w, b]
    return tuple(params)


def reference_forward(x, params):
    w1, b1, w2, b2, w3, b3, w4, b4 = params
    h = jnp.maximum(x @ w1 + b1, 0.0)
    h = jnp.maximum(h @ w2 + b2, 0.0)
    h = jnp.maximum(h @ w3 + b3, 0.0)
    return h @ w4 + b4


if __name__ == "__main__":
    # Shapes implied by Net(in_dim, n_hidden_1, n_hidden_2, n_hidden_3, out_dim)
    batch, in_dim, h1, h2, h3, out_dim = 8, 16, 64, 32, 32, 4

    key = jax.random.PRNGKey(0)
    kx, kp = jax.random.split(key)
    x = jax.random.normal(kx, (batch, in_dim), dtype=jnp.float32)
    raw_params = init_params(kp, in_dim, h1, h2, h3, out_dim)

    # --- f32 path: exact parity with the reference ------------------------- #
    params_f32 = prepare_params(raw_params, jnp.float32)
    out = jax.block_until_ready(mlp_forward(x, params_f32))
    ref = reference_forward(x, raw_params)
    assert out.shape == (batch, out_dim)
    assert jnp.allclose(out, ref, atol=1e-5, rtol=1e-5)

    # --- bf16 weights/x (f32 accumulation), gridded multi-tile batch ------- #
    big_batch = 1536   # -> tb=768, 2 grid steps (balanced across v7x's 2 TCs)
    xb = jax.random.normal(kx, (big_batch, in_dim), dtype=jnp.float32)
    params_bf16 = prepare_params(raw_params, jnp.bfloat16)
    out_big = jax.block_until_ready(mlp_forward(xb, params_bf16))
    ref_big = reference_forward(xb, raw_params)
    assert out_big.shape == (big_batch, out_dim)
    assert jnp.allclose(out_big, ref_big, atol=5e-2, rtol=5e-2)

    print("KERNEL_OK")
</pallas_src>

<mosaic_0001>
module attributes {stable_mosaic.version = 11 : i64} {
  func.func @_mlp_kernel(%arg0: i32, %arg1: memref<8x16xf32, #tpu.memory_space<vmem>>, %arg2: memref<16x64xf32, #tpu.memory_space<vmem>>, %arg3: memref<1x64xf32, #tpu.memory_space<vmem>>, %arg4: memref<64x32xf32, #tpu.memory_space<vmem>>, %arg5: memref<1x32xf32, #tpu.memory_space<vmem>>, %arg6: memref<32x32xf32, #tpu.memory_space<vmem>>, %arg7: memref<1x32xf32, #tpu.memory_space<vmem>>, %arg8: memref<32x4xf32, #tpu.memory_space<vmem>>, %arg9: memref<1x4xf32, #tpu.memory_space<vmem>>, %arg10: memref<8x4xf32, #tpu.memory_space<vmem>>) attributes {dimension_semantics = [#tpu.dimension_semantics<parallel>], iteration_bounds = array<i64: 1>, scalar_prefetch = 0 : i64, scratch_operands = 0 : i64, tpu.core_type = #tpu.core_type<tc>, window_params = [{transform_indices = @transform_0, window_bounds = array<i64: 8, 16>}, {pipeline_mode = #tpu.pipeline_mode<synchronous>, transform_indices = @transform_1, window_bounds = array<i64: 16, 64>}, {pipeline_mode = #tpu.pipeline_mode<synchronous>, transform_indices = @transform_2, window_bounds = array<i64: 1, 64>}, {pipeline_mode = #tpu.pipeline_mode<synchronous>, transform_indices = @transform_3, window_bounds = array<i64: 64, 32>}, {pipeline_mode = #tpu.pipeline_mode<synchronous>, transform_indices = @transform_4, window_bounds = array<i64: 1, 32>}, {pipeline_mode = #tpu.pipeline_mode<synchronous>, transform_indices = @transform_5, window_bounds = array<i64: 32, 32>}, {pipeline_mode = #tpu.pipeline_mode<synchronous>, transform_indices = @transform_6, window_bounds = array<i64: 1, 32>}, {pipeline_mode = #tpu.pipeline_mode<synchronous>, transform_indices = @transform_7, window_bounds = array<i64: 32, 4>}, {pipeline_mode = #tpu.pipeline_mode<synchronous>, transform_indices = @transform_8, window_bounds = array<i64: 1, 4>}, {transform_indices = @transform_9, window_bounds = array<i64: 8, 4>}]} {
    %c0 = arith.constant 0 : index
    %c0_0 = arith.constant 0 : index
    %0 = vector.load %arg1[%c0, %c0_0] : memref<8x16xf32, #tpu.memory_space<vmem>>, vector<8x16xf32>
    %c0_1 = arith.constant 0 : index
    %c0_2 = arith.constant 0 : index
    %1 = vector.load %arg2[%c0_1, %c0_2] : memref<16x64xf32, #tpu.memory_space<vmem>>, vector<16x64xf32>
    %cst = arith.constant dense<0.000000e+00> : vector<8x64xf32>
    %2 = tpu.matmul %0, %1, %cst {dimension_numbers = #tpu.dot_dimension_numbers<[1], [0], [0], [1], [0, 0, 1, 1], [], []>} : vector<8x16xf32>, vector<16x64xf32>, vector<8x64xf32> -> vector<8x64xf32>
    %c0_3 = arith.constant 0 : index
    %c0_4 = arith.constant 0 : index
    %3 = vector.load %arg3[%c0_3, %c0_4] : memref<1x64xf32, #tpu.memory_space<vmem>>, vector<1x64xf32>
    %4 = vector.broadcast %3 : vector<1x64xf32> to vector<8x64xf32>
    %5 = arith.addf %2, %4 : vector<8x64xf32>
    %cst_5 = arith.constant 0.000000e+00 : f32
    %6 = vector.broadcast %cst_5 : f32 to vector<8x64xf32>
    %7 = arith.maximumf %5, %6 : vector<8x64xf32>
    %c0_6 = arith.constant 0 : index
    %c0_7 = arith.constant 0 : index
    %8 = vector.load %arg4[%c0_6, %c0_7] : memref<64x32xf32, #tpu.memory_space<vmem>>, vector<64x32xf32>
    %cst_8 = arith.constant dense<0.000000e+00> : vector<8x32xf32>
    %9 = tpu.matmul %7, %8, %cst_8 {dimension_numbers = #tpu.dot_dimension_numbers<[1], [0], [0], [1], [0, 0, 1, 1], [], []>} : vector<8x64xf32>, vector<64x32xf32>, vector<8x32xf32> -> vector<8x32xf32>
    %c0_9 = arith.constant 0 : index
    %c0_10 = arith.constant 0 : index
    %10 = vector.load %arg5[%c0_9, %c0_10] : memref<1x32xf32, #tpu.memory_space<vmem>>, vector<1x32xf32>
    %11 = vector.broadcast %10 : vector<1x32xf32> to vector<8x32xf32>
    %12 = arith.addf %9, %11 : vector<8x32xf32>
    %cst_11 = arith.constant 0.000000e+00 : f32
    %13 = vector.broadcast %cst_11 : f32 to vector<8x32xf32>
    %14 = arith.maximumf %12, %13 : vector<8x32xf32>
    %c0_12 = arith.constant 0 : index
    %c0_13 = arith.constant 0 : index
    %15 = vector.load %arg6[%c0_12, %c0_13] : memref<32x32xf32, #tpu.memory_space<vmem>>, vector<32x32xf32>
    %cst_14 = arith.constant dense<0.000000e+00> : vector<8x32xf32>
    %16 = tpu.matmul %14, %15, %cst_14 {dimension_numbers = #tpu.dot_dimension_numbers<[1], [0], [0], [1], [0, 0, 1, 1], [], []>} : vector<8x32xf32>, vector<32x32xf32>, vector<8x32xf32> -> vector<8x32xf32>
    %c0_15 = arith.constant 0 : index
    %c0_16 = arith.constant 0 : index
    %17 = vector.load %arg7[%c0_15, %c0_16] : memref<1x32xf32, #tpu.memory_space<vmem>>, vector<1x32xf32>
    %18 = vector.broadcast %17 : vector<1x32xf32> to vector<8x32xf32>
    %19 = arith.addf %16, %18 : vector<8x32xf32>
    %cst_17 = arith.constant 0.000000e+00 : f32
    %20 = vector.broadcast %cst_17 : f32 to vector<8x32xf32>
    %21 = arith.maximumf %19, %20 : vector<8x32xf32>
    %c0_18 = arith.constant 0 : index
    %c0_19 = arith.constant 0 : index
    %22 = vector.load %arg8[%c0_18, %c0_19] : memref<32x4xf32, #tpu.memory_space<vmem>>, vector<32x4xf32>
    %cst_20 = arith.constant dense<0.000000e+00> : vector<8x4xf32>
    %23 = tpu.matmul %21, %22, %cst_20 {dimension_numbers = #tpu.dot_dimension_numbers<[1], [0], [0], [1], [0, 0, 1, 1], [], []>} : vector<8x32xf32>, vector<32x4xf32>, vector<8x4xf32> -> vector<8x4xf32>
    %c0_21 = arith.constant 0 : index
    %c0_22 = arith.constant 0 : index
    %24 = vector.load %arg9[%c0_21, %c0_22] : memref<1x4xf32, #tpu.memory_space<vmem>>, vector<1x4xf32>
    %25 = vector.broadcast %24 : vector<1x4xf32> to vector<8x4xf32>
    %26 = arith.addf %23, %25 : vector<8x4xf32>
    %c0_23 = arith.constant 0 : index
    %c0_24 = arith.constant 0 : index
    %27 = vector.load %arg10[%c0_23, %c0_24] : memref<8x4xf32, #tpu.memory_space<vmem>>, vector<8x4xf32>
    tpu.vector_store %arg10[%c0_23, %c0_24], %26 {strides = array<i32>} : memref<8x4xf32, #tpu.memory_space<vmem>>, vector<8x4xf32>,
    return
  }
  func.func @transform_0(%arg0: i32) -> (i32, i32) {
    %c0_i32 = arith.constant 0 : i32
    %c0_i32_0 = arith.constant 0 : i32
    return %arg0, %c0_i32 : i32, i32
  }
  func.func @transform_1(%arg0: i32) -> (i32, i32) {
    %c0_i32 = arith.constant 0 : i32
    %c0_i32_0 = arith.constant 0 : i32
    %c0_i32_1 = arith.constant 0 : i32
    return %c0_i32, %c0_i32_0 : i32, i32
  }
  func.func @transform_2(%arg0: i32) -> (i32, i32) {
    %c0_i32 = arith.constant 0 : i32
    %c0_i32_0 = arith.constant 0 : i32
    %c0_i32_1 = arith.constant 0 : i32
    return %c0_i32, %c0_i32_0 : i32, i32
  }
  func.func @transform_3(%arg0: i32) -> (i32, i32) {
    %c0_i32 = arith.constant 0 : i32
    %c0_i32_0 = arith.constant 0 : i32
    %c0_i32_1 = arith.constant 0 : i32
    return %c0_i32, %c0_i32_0 : i32, i32
  }
  func.func @transform_4(%arg0: i32) -> (i32, i32) {
    %c0_i32 = arith.constant 0 : i32
    %c0_i32_0 = arith.constant 0 : i32
    %c0_i32_1 = arith.constant 0 : i32
    return %c0_i32, %c0_i32_0 : i32, i32
  }
  func.func @transform_5(%arg0: i32) -> (i32, i32) {
    %c0_i32 = arith.constant 0 : i32
    %c0_i32_0 = arith.constant 0 : i32
    %c0_i32_1 = arith.constant 0 : i32
    return %c0_i32, %c0_i32_0 : i32, i32
  }
  func.func @transform_6(%arg0: i32) -> (i32, i32) {
    %c0_i32 = arith.constant 0 : i32
    %c0_i32_0 = arith.constant 0 : i32
    %c0_i32_1 = arith.constant 0 : i32
    return %c0_i32, %c0_i32_0 : i32, i32
  }
  func.func @transform_7(%arg0: i32) -> (i32, i32) {
    %c0_i32 = arith.constant 0 : i32
    %c0_i32_0 = arith.constant 0 : i32
    %c0_i32_1 = arith.constant 0 : i32
    return %c0_i32, %c0_i32_0 : i32, i32
  }
  func.func @transform_8(%arg0: i32) -> (i32, i32) {
    %c0_i32 = arith.constant 0 : i32
    %c0_i32_0 = arith.constant 0 : i32
    %c0_i32_1 = arith.constant 0 : i32
    return %c0_i32, %c0_i32_0 : i32, i32
  }
  func.func @transform_9(%arg0: i32) -> (i32, i32) {
    %c0_i32 = arith.constant 0 : i32
    %c0_i32_0 = arith.constant 0 : i32
    return %arg0, %c0_i32 : i32, i32
  }
}

</mosaic_0001>

<bundles_post_ra>
// kernel: mlp_forward.1
= control target key start
LH: loop header
LB: loop body
LE: loop exit
PB: predicated region body
PF: predicated region fallthrough
CT: control target
= control target key end

     0   :  { %v491_v0 = vmov 0.0|0.0   ;;  %vm492_vm0 = vmmov 0   ;;  %v493_v3 = vmov 0.0   ;;  %vm42_vm1 = vcmask 130048   ;;  %s635_s1 = inlined_call_operand.vmem [shape: f32[16,64], index: 1, kind: input, shape index: {}]   ;;  %s636_s3 = inlined_call_operand.vmem [shape: f32[64,32], index: 3, kind: input, shape index: {}]   ;;  %s637_s0 = inlined_call_operand.vmem [shape: f32[8,16], index: 0, kind: input, shape index: {}]   ;;  %s638_s5 = inlined_call_operand.vmem [shape: f32[32,32], index: 5, kind: input, shape index: {}]   ;;  %s639_s2 = inlined_call_operand.vmem [shape: f32[1,64], index: 2, kind: input, shape index: {}]   ;;  %s640_s4 = inlined_call_operand.vmem [shape: f32[1,32], index: 4, kind: input, shape index: {}]   ;;  %s641_s7 = inlined_call_operand.vmem [shape: f32[32,4], index: 7, kind: input, shape index: {}]   ;;  %s642_s6 = inlined_call_operand.vmem [shape: f32[1,32], index: 6, kind: input, shape index: {}]   ;;  %s643_s8 = inlined_call_operand.vmem [shape: f32[1,4], index: 8, kind: input, shape index: {}]   ;;  %s644_s9 = inlined_call_operand.vmem [shape: f32[8,4], index: 9, kind: output, shape index: {}]  }
   0x1   :  { %461 = vmatprep.subr.bf16.mxu0 %v491_v0  ;;  %v33_v1 = vld [vmem:[%s635_s1] sm:$0xff]  ;;  %v34_v2 = vld [vmem:[%s635_s1 + $0x8] sm:$0xff]  ;;  %417 = vmatprep.mubr.msk.f32.mxu0 %vm492_vm0, %v493_v3  ;;  %v119_v7 = vld [vmem:[%s636_s3 + $0x10] sm:$0xff]  ;;  %vm132_vm2 = vcmask 523264   ;;  %vm218_vm3 = vcmask 261120   ;;  %vm377_vm4 = vcmask 31744  }
   0x2   :  { %v462_v4 = vpack.c.bf16 %v34_v2, %v33_v1  ;;  %464 = vmatprep.subr.bf16.mxu1 %v491_v0  ;;  %v117_v5 = vld [vmem:[%s636_s3] sm:$0xff]  ;;  %v118_v6 = vld [vmem:[%s636_s3 + $0x8] sm:$0xff]  ;;  %436 = vmatprep.mubr.msk.f32.mxu1 %vm492_vm0, %v493_v3  ;;  %v120_v9 = vld [vmem:[%s636_s3 + $0x18] sm:$0xff] }
   0x3   :  { %v465_v8 = vpack.c.bf16 %v118_v6, %v117_v5  ;;  %v32_v10 = vld [vmem:[%s637_s0] sm:$0xff]  ;;  %v468_v11 = vpack.c.bf16 %v120_v9, %v119_v7  ;;  %v122_v13 = vld [vmem:[%s636_s3 + $0x28] sm:$0xff]  ;;  %v123_v15 = vld [vmem:[%s636_s3 + $0x30] sm:$0xff] }
   0x4   :  { %463 = vmatpush3.bf16.msra.mxu0 %v462_v4  ;;  %v121_v12 = vld [vmem:[%s636_s3 + $0x20] sm:$0xff]  ;;  %v124_v16 = vld [vmem:[%s636_s3 + $0x38] sm:$0xff]  ;;  %v208_v19 = vld [vmem:[%s638_s5 + $0x8] sm:$0xff] }
   0x5   :  { %466 = vmatpush3.bf16.msra.mxu1 %v465_v8  ;;  %476 = vmatprep.subr.bf16.mxu0 %v491_v0  ;;  %v471_v14 = vpack.c.bf16 %v122_v13, %v121_v12  ;;  %v474_v17 = vpack.c.bf16 %v124_v16, %v123_v15  ;;  %v207_v18 = vld [vmem:[%s638_s5] sm:$0xff]  ;;  %v209_v26 = vld [vmem:[%s638_s5 + $0x10] sm:$0xff]  ;;  %v210_v27 = vld [vmem:[%s638_s5 + $0x18] sm:$0xff] }
   0x6   :  { %467 = vmatprep.subr.bf16.mxu1 %v491_v0  ;;  %v477_v20 = vpack.c.bf16 %v208_v19, %v207_v18  ;;  %v383_v21 = vld [vmem:[%s639_s2] ss:$0 sm:$0xff]  ;;  %v480_v28 = vpack.c.bf16 %v210_v27, %v209_v26  ;;  %v294_v31 = vld [vmem:[%s641_s7 + $0x8] sm:$0xff]  ;;  %v295_v37 = vld [vmem:[%s641_s7 + $0x10] sm:$0xff] }
   0x7   :  { %418 = vmatmul.mubr.msk.f32.vlgmr.msra.gmra.mrb[0].mxu0 %vm42_vm1, %v32_v10  ;;  %v385_v29 = vld [vmem:[%s640_s4] ss:$0 sm:$0xff]  ;;  %v296_v38 = vld [vmem:[%s641_s7 + $0x18] sm:$0xff] }
   0x8   :  { %447 = vmatprep.mubr.msk.f32.mxu0 %vm492_vm0, %v493_v3  ;;  %478 = vmatpush3.bf16.msra.mxu0 %v477_v20  ;;  %v293_v30 = vld [vmem:[%s641_s7] sm:$0xff]  ;;  %v486_v39 = vpack.c.bf16 %v296_v38, %v295_v37 }
   0x9   :  { %469 = vmatpush3.bf16.msra.mxu1 %v468_v11  ;;  %479 = vmatprep.subr.bf16.mxu0 %v491_v0  ;;  %v483_v35 = vpack.c.bf16 %v294_v31, %v293_v30  ;;  %v387_v40 = vld [vmem:[%s642_s6] ss:$0 sm:$0xff] }
   0xa   :  { %470 = vmatprep.subr.bf16.mxu1 %v491_v0  ;;  %v389_v45 = vld [vmem:[%s643_s8] ss:$0 sm:$0xff] }
   0xc   :  { %481 = vmatpush3.bf16.msra.mxu0 %v480_v28 }
   0xd   :  { %472 = vmatpush3.bf16.msra.mxu1 %v471_v14  ;;  %482 = vmatprep.subr.bf16.mxu0 %v491_v0 }
   0xe   :  { %473 = vmatprep.subr.bf16.mxu1 %v491_v0 }
  0x11   :  { %475 = vmatpush3.bf16.msra.mxu1 %v474_v17 }
  0xda   :  { %v112_v22 = vpop.f32.mrb[0].mxu0 }
  0xdb   :  { %v113_v23 = vadd.f32 %v383_v21, %v112_v22  ;;  %v419_v24 = vpop.f32.mrb[1].mxu0 }
  0xdd   :  { %v116_v25 = vmax.f32 %v113_v23, 0.0 }
  0xdf   :  { %437 = vmatmul.mubr.msk.f32.vlgmr.msra.gmra.mrb[0].mxu1 %vm132_vm2, %v116_v25 }
 0x1b2   :  { %v202_v32 = vpop.f32.mrb[0].mxu1 }
 0x1b3   :  { %v203_v33 = vadd.f32 %v385_v29, %v202_v32  ;;  %v438_v34 = vpop.f32.mrb[1].mxu1 }
 0x1b5   :  { %v206_v36 = vmax.f32 %v203_v33, 0.0 }
 0x1b7   :  { %448 = vmatmul.mubr.msk.f32.vlgmr.msra.gmra.mrb[2].mxu0 %vm218_vm3, %v206_v36 }
 0x1b8   :  { %484 = vmatpush3.bf16.msra.mxu0 %v483_v35  ;;  %458 = vmatprep.mubr.msk.f32.mxu0 %vm492_vm0, %v493_v3 }
 0x1b9   :  { %485 = vmatprep.subr.bf16.mxu0 %v491_v0 }
 0x1bc   :  { %487 = vmatpush3.bf16.msra.mxu0 %v486_v39 }
 0x28a   :  { %v288_v41 = vpop.f32.mrb[2].mxu0 }
 0x28b   :  { %v289_v42 = vadd.f32 %v387_v40, %v288_v41  ;;  %v449_v43 = vpop.f32.mrb[3].mxu0 }
 0x28d   :  { %v292_v44 = vmax.f32 %v289_v42, 0.0 }
 0x28f   :  { %459 = vmatmul.mubr.msk.f32.vlgmr.msra.gmra.mrb[4].mxu0 %vm218_vm3, %v292_v44 }
 0x362   :  { %v373_v46 = vpop.f32.mrb[4].mxu0 }
 0x363   :  { %v374_v47 = vadd.f32 %v389_v45, %v373_v46  ;;  %v460_v48 = vpop.f32.mrb[5].mxu0 }
 0x365   :  { %378 = vst.msk [vmem:[%s644_s9] sm:$0xff] %vm377_vm4, %v374_v47 }

</bundles_post_ra>
